<compile_context>
chip_gen: v7x
topology: tpu7x:2x2x1
jax: 0.10.0
libtpu: 0.0.40
codegen_flags: <defaults>
</compile_context>

<pallas_src>
import jax
import jax.numpy as jnp
import numpy as np
from jax import lax
from jax.experimental import pallas as pl
from jax.experimental.pallas import tpu as pltpu

_EPS = 1e-6
_CHUNK_TARGET = 512   # rows per in-kernel reduction/apply chunk (fused path)
_TILE_TARGET = 512    # rows per spatial tile (two-pass fallback)


# --------------------------------------------------------------------------
# Kernels
# --------------------------------------------------------------------------
def _make_fused_kernel(hw, chunk):
    """Fused single pass over one batch element.  x_ref: (1, HW, C).

    sum(x^2) is accumulated chunk-by-chunk into a (1, C) f32 VMEM scratch so
    no full f32 copy of the slab is ever materialized; the apply is computed
    in f32 and only the final store is cast to the output dtype."""
    n_chunks = hw // chunk

    def kernel(x_ref, gamma_ref, beta_ref, o_ref, ss_ref):
        if n_chunks == 1:
            # Tiny-image straight-line path (slab <= chunk target rows).
            xf = x_ref[0].astype(jnp.float32)                        # (HW, C)
            ss = jnp.sum(xf * xf, axis=0, keepdims=True)             # (1, C)
            gx = jnp.sqrt(ss)
            mean = jnp.mean(gx, axis=-1, keepdims=True)
            nx = gx * pl.reciprocal(mean + _EPS, approx=False)
            coef = gamma_ref[0] * nx + 1.0                           # (1, C) f32
            o_ref[0] = (xf * coef + beta_ref[0]).astype(o_ref.dtype)
            return

        ss_ref[...] = jnp.zeros_like(ss_ref)

        def sumsq_body(i, carry):
            start = pl.multiple_of(i * chunk, chunk)
            xc = x_ref[0, pl.ds(start, chunk), :].astype(jnp.float32)
            ss_ref[...] += jnp.sum(xc * xc, axis=0, keepdims=True)
            return carry

        lax.fori_loop(0, n_chunks, sumsq_body, 0)

        gx = jnp.sqrt(ss_ref[...])                                   # (1, C)
        mean = jnp.mean(gx, axis=-1, keepdims=True)
        nx = gx * pl.reciprocal(mean + _EPS, approx=False)
        coef = gamma_ref[0] * nx + 1.0                               # (1, C) f32
        beta = beta_ref[0]                                           # (1, C) f32

        def apply_body(i, carry):
            start = pl.multiple_of(i * chunk, chunk)
            xc = x_ref[0, pl.ds(start, chunk), :].astype(jnp.float32)
            o_ref[0, pl.ds(start, chunk), :] = (xc * coef + beta).astype(o_ref.dtype)
            return carry

        lax.fori_loop(0, n_chunks, apply_body, 0)

    return kernel


def _make_sumsq_kernel(tile, hw, tiles_per_split, needs_mask):
    """Two-pass, pass 1: accumulate partial sum(x^2) over spatial tiles into a
    (1,1,1,C) f32 output block.  Grid = (N, n_split, tiles_per_split) with the
    reduction axis last; a ragged last tile is masked."""

    def kernel(x_ref, ss_ref):
        s = pl.program_id(2)

        @pl.when(s == 0)
        def _():
            ss_ref[...] = jnp.zeros_like(ss_ref)

        xf = x_ref[0].astype(jnp.float32)                            # (T, C)
        if needs_mask:
            tile_idx = pl.program_id(1) * tiles_per_split + s
            row = tile_idx * tile + lax.broadcasted_iota(jnp.int32, (tile, 1), 0)
            xf = jnp.where(row < hw, xf, 0.0)
        ss_ref[...] += jnp.sum(xf * xf, axis=0, keepdims=True)[None, None]

    return kernel


def _apply_kernel(x_ref, coef_ref, beta_ref, o_ref):
    """Two-pass, pass 2: out = x * coef + beta (f32 math, cast at store)."""
    xf = x_ref[...].astype(jnp.float32)                              # (1, T, C)
    o_ref[...] = (xf * coef_ref[...] + beta_ref[...]).astype(o_ref.dtype)


# --------------------------------------------------------------------------
# Sizing helpers
# --------------------------------------------------------------------------
def _physical_vmem_bytes():
    try:
        return int(pltpu.get_tpu_info().vmem_capacity_bytes)
    except Exception:
        return 64 * 1024 * 1024   # conservative: v7x per-TensorCore VMEM


def _num_tensorcores():
    """Best-effort TensorCores-per-chip query (v7x=2, v5e/v6e=1)."""
    try:
        info = pltpu.get_tpu_info()
        for name in ("num_cores", "core_count", "num_tensorcores",
                     "tensorcore_count", "cores_per_chip"):
            v = getattr(info, name, None)
            if isinstance(v, int) and v > 0:
                return v
    except Exception:
        pass
    return 1


def _compiler_params(need_bytes, dim_sem):
    phys = _physical_vmem_bytes()
    need = int(need_bytes)
    limit = max(2 * need, need + (2 << 20), 8 << 20)   # no big unconditional floor
    limit = min(limit, int(0.85 * phys))
    return pltpu.CompilerParams(dimension_semantics=dim_sem,
                                vmem_limit_bytes=int(limit))


def _round_up(v, m):
    return ((v + m - 1) // m) * m


def _pick_chunk(hw, target=_CHUNK_TARGET):
    """Largest divisor of hw that is a multiple of 8 and <= target."""
    if hw <= target:
        return hw
    for t in range(target, 7, -1):
        if hw % t == 0 and t % 8 == 0:
            return t
    for t in range(target, 0, -1):
        if hw % t == 0:
            return t
    return hw


def _pick_spatial_tile(hw, c, itemsize, budget, target=_TILE_TARGET):
    """Spatial tile for the two-pass fallback: capped at `target` rows,
    sublane-aligned (x16 for 2-byte dtypes), sized against the pass-2
    double-buffered in+out footprint.  Divisors of hw are preferred, but a
    ragged (masked) last tile is allowed."""
    align = 16 if itemsize < 4 else 8

    def fits(t):
        return 4 * t * c * itemsize + t * c * 4 + (1 << 20) <= budget

    if hw <= target and fits(hw):
        return hw
    t = min(target, max(align, (hw // align) * align))
    t = max(t, align)
    while t > align and not fits(t):
        t -= align
    lo = max(align, t // 2)
    for d in range(t, lo - 1, -align):      # prefer exact divisors near t
        if hw % d == 0:
            return d
    return t


# --------------------------------------------------------------------------
# Wrapper
# --------------------------------------------------------------------------
def grn(x, gamma, beta, *, spatial_tile=None, chunk=None, fused_buffering=None,
        donate_x=False, num_cores=None):
    """GRN forward.  x: (N, H, W, C);  gamma, beta broadcastable to (1,1,1,C).

    spatial_tile:    force the two-pass fallback with this many rows per tile.
    chunk:           rows per in-kernel reduction chunk of the fused path.
    fused_buffering: None = auto; 2 = double-buffered fused only;
                     1 = single-buffered fused (pl.Buffered(1)) before the
                     two-pass fallback.
    donate_x:        alias x with the output (caller must not reuse x).
    num_cores:       TensorCores per chip (auto-detected); batch < num_cores is
                     routed to the spatially-parallel two-pass path.
    """
    N, H, W, C = x.shape
    HW = H * W
    x_flat = x.reshape(N, HW, C)
    g = jnp.asarray(gamma, jnp.float32).reshape(1, 1, C)
    b = jnp.asarray(beta, jnp.float32).reshape(1, 1, C)
    itemsize = jnp.dtype(x.dtype).itemsize

    budget = int(0.8 * _physical_vmem_bytes())
    if num_cores is None:
        num_cores = _num_tensorcores()

    # Small batches (< #TensorCores, e.g. batch-1 inference on v7x) go to the
    # two-pass path: its spatial grid axes are 'parallel', so both cores work.
    multicore_split = (num_cores >= 2 and N < num_cores and HW >= 16 * num_cores)
    force_two_pass = (spatial_tile is not None) or multicore_split

    # ---------------- fused 1-read/1-write fast path ----------------------
    def _fused(buffering):
        ck = chunk if (chunk is not None and chunk > 0 and HW % chunk == 0) else _pick_chunk(HW)
        # per-step VMEM: `buffering` in-slabs + `buffering` out-slabs + chunk
        # f32 temporaries + slack (the whole-slab f32 temp is gone).
        need = 2 * buffering * HW * C * itemsize + 2 * ck * C * 4 + (1 << 20)
        if need > budget:
            return None
        spec_kw = dict(pipeline_mode=pl.Buffered(1)) if buffering == 1 else {}
        x_spec = pl.BlockSpec((1, HW, C), lambda n: (n, 0, 0), **spec_kw)
        o_spec = pl.BlockSpec((1, HW, C), lambda n: (n, 0, 0), **spec_kw)
        call = pl.pallas_call(
            _make_fused_kernel(HW, ck),
            out_shape=jax.ShapeDtypeStruct((N, HW, C), x.dtype),
            grid_spec=pltpu.PrefetchScalarGridSpec(
                num_scalar_prefetch=0,
                grid=(N,),
                in_specs=[x_spec,
                          pl.BlockSpec((1, 1, C), lambda n: (0, 0, 0)),
                          pl.BlockSpec((1, 1, C), lambda n: (0, 0, 0))],
                out_specs=o_spec,
                scratch_shapes=[pltpu.VMEM((1, C), jnp.float32)]),
            compiler_params=_compiler_params(need, ("parallel",)),
            input_output_aliases=({0: 0} if donate_x else {}),
        )
        return call(x_flat, g, b)

    if not force_two_pass:
        tiers = {None: (2, 1), 2: (2,), 1: (1,)}.get(fused_buffering, (2, 1))
        for buffering in tiers:
            if buffering == 2:
                out_flat = _fused(2)
            else:
                try:                       # pipeline_mode=pl.Buffered(1) tier
                    out_flat = _fused(1)
                except Exception:
                    out_flat = None        # unsupported -> two-pass fallback
            if out_flat is not None:
                return out_flat.reshape(N, H, W, C)

    # ---------------- two-pass spatially-tiled fallback --------------------
    align = 16 if itemsize < 4 else 8
    if spatial_tile is not None:
        T = int(spatial_tile)
        if T < HW and T % align:
            T = _round_up(T, align)
        T = min(T, _round_up(HW, align))
    else:
        target = _TILE_TARGET
        if multicore_split:
            # Guarantee enough tiles so both cores get spatial work.
            target = min(target, max(align, HW // (2 * num_cores)))
        T = _pick_spatial_tile(HW, C, itemsize, budget, target=target)

    n_tiles = (HW + T - 1) // T
    needs_mask = (HW % T) != 0
    n_split = 2 if (n_tiles >= 2 and n_tiles % 2 == 0) else 1
    tiles_per_split = n_tiles // n_split

    pass1_need = 2 * T * C * itemsize + T * C * 4 + (1 << 20)
    pass2_need = 4 * T * C * itemsize + T * C * 4 + (1 << 20)

    # Pass 1: per-(batch, channel) partial sums of squares.  The size-n_split
    # parallel spatial axis keeps both v7x TensorCores busy even at batch-1.
    partial = pl.pallas_call(
        _make_sumsq_kernel(T, HW, tiles_per_split, needs_mask),
        out_shape=jax.ShapeDtypeStruct((N, n_split, 1, C), jnp.float32),
        grid_spec=pltpu.PrefetchScalarGridSpec(
            num_scalar_prefetch=0,
            grid=(N, n_split, tiles_per_split),          # reduction axis last
            in_specs=[pl.BlockSpec(
                (1, T, C), lambda n, p, s: (n, p * tiles_per_split + s, 0))],
            out_specs=pl.BlockSpec((1, 1, 1, C), lambda n, p, s: (n, p, 0, 0)),
        ),
        compiler_params=_compiler_params(
            pass1_need, ("parallel", "parallel", "arbitrary")),
    )(x_flat)

    # Tiny (N,1,C) epilogue in plain JAX: Gx, Nx, coef = gamma*Nx + 1.
    ss = jnp.sum(partial, axis=1)                        # (N, 1, C) f32
    gx = jnp.sqrt(ss)
    nx = gx / (jnp.mean(gx, axis=-1, keepdims=True) + _EPS)
    coef = g * nx + 1.0                                  # (N, 1, C) f32

    # Pass 2: fully parallel elementwise apply.
    out_flat = pl.pallas_call(
        _apply_kernel,
        out_shape=jax.ShapeDtypeStruct((N, HW, C), x.dtype),
        grid_spec=pltpu.PrefetchScalarGridSpec(
            num_scalar_prefetch=0,
            grid=(N, n_tiles),
            in_specs=[
                pl.BlockSpec((1, T, C), lambda n, s: (n, s, 0)),
                pl.BlockSpec((1, 1, C), lambda n, s: (n, 0, 0)),
                pl.BlockSpec((1, 1, C), lambda n, s: (0, 0, 0)),
            ],
            out_specs=pl.BlockSpec((1, T, C), lambda n, s: (n, s, 0)),
        ),
        compiler_params=_compiler_params(pass2_need, ("parallel", "parallel")),
        input_output_aliases=({0: 0} if donate_x else {}),
    )(x_flat, coef, b)
    return out_flat.reshape(N, H, W, C)


# --------------------------------------------------------------------------
# Pure-JAX reference mirroring the PyTorch forward (NHWC layout).
# --------------------------------------------------------------------------
def grn_reference(x, gamma, beta):
    x32 = x.astype(jnp.float32)
    gx = jnp.sqrt(jnp.sum(x32 * x32, axis=(1, 2), keepdims=True))   # (N,1,1,C)
    nx = gx / (jnp.mean(gx, axis=-1, keepdims=True) + _EPS)
    return (gamma * (x32 * nx) + beta + x32).astype(x.dtype)


if __name__ == "__main__":
    key = jax.random.PRNGKey(0)
    kx, kg, kb = jax.random.split(key, 3)

    def check(out, ref, rtol=1e-5, atol=1e-5):
        np.testing.assert_allclose(np.asarray(out, dtype=np.float32),
                                   np.asarray(ref, dtype=np.float32),
                                   rtol=rtol, atol=atol)

    # Lane-dense channel count (C multiple of 128), small spatial/batch.
    N, H, W, C = 2, 8, 8, 128
    x = jax.random.normal(kx, (N, H, W, C), dtype=jnp.float32)
    # PyTorch zero-inits gamma/beta; use small random values so the
    # normalization path is actually exercised.
    gamma = 0.1 * jax.random.normal(kg, (1, 1, 1, C), dtype=jnp.float32)
    beta = 0.1 * jax.random.normal(kb, (1, 1, 1, C), dtype=jnp.float32)
    ref = grn_reference(x, gamma, beta)

    # 1) fused fast path with the chunked in-kernel reduction loop (chunk < HW).
    check(jax.block_until_ready(grn(x, gamma, beta, chunk=16)), ref)

    # 2) fused fast path, auto chunk (straight-line single chunk here).
    check(jax.block_until_ready(grn(x, gamma, beta)), ref)

    # 3) single-buffered fused tier (pl.Buffered(1); auto-falls back to the
    #    two-pass path if pipeline_mode is unsupported).
    check(jax.block_until_ready(grn(x, gamma, beta, fused_buffering=1)), ref)

    # 4) forced two-pass fallback with a divisor tile (exercises split pass-1).
    check(jax.block_until_ready(grn(x, gamma, beta, spatial_tile=16)), ref)

    # 5) bf16 HBM I/O (apply math stays f32; only the store is bf16).
    xb = x.astype(jnp.bfloat16)
    check(jax.block_until_ready(grn(xb, gamma, beta)),
          grn_reference(xb, gamma, beta), rtol=2e-2, atol=2e-2)

    # 6) ragged (non-divisor) spatial tile: HW=196 with T=64 -> masked tail.
    x6 = jax.random.normal(kx, (2, 14, 14, C), dtype=jnp.float32)
    check(jax.block_until_ready(grn(x6, gamma, beta, spatial_tile=64)),
          grn_reference(x6, gamma, beta))

    # 7) batch-1 routed to the spatially-parallel two-pass path (v7x 2-TC case).
    x7 = jax.random.normal(kb, (1, 16, 16, C), dtype=jnp.float32)
    check(jax.block_until_ready(grn(x7, gamma, beta, num_cores=2)),
          grn_reference(x7, gamma, beta))

    # 8) non-128-multiple C (masked lane stores) still correct.
    C2 = 32
    x8 = jax.random.normal(kx, (2, 16, 16, C2), dtype=jnp.float32)
    g8 = 0.1 * jax.random.normal(kg, (1, 1, 1, C2), dtype=jnp.float32)
    b8 = 0.1 * jax.random.normal(kb, (1, 1, 1, C2), dtype=jnp.float32)
    check(jax.block_until_ready(grn(x8, g8, b8)), grn_reference(x8, g8, b8))

    # 9) donated input (output may alias x9) — x9 is not reused afterwards.
    x9 = jax.random.normal(kg, (2, 8, 8, C), dtype=jnp.float32)
    ref9 = grn_reference(x9, gamma, beta)
    check(jax.block_until_ready(grn(x9, gamma, beta, donate_x=True)), ref9)

    print("KERNEL_OK")
</pallas_src>

<mosaic_0001>
module attributes {stable_mosaic.version = 11 : i64} {
  func.func @kernel(%arg0: i32, %arg1: memref<1x64x128xf32, #tpu.memory_space<vmem>>, %arg2: memref<1x1x128xf32, #tpu.memory_space<vmem>>, %arg3: memref<1x1x128xf32, #tpu.memory_space<vmem>>, %arg4: memref<1x64x128xf32, #tpu.memory_space<vmem>>, %arg5: memref<1x128xf32, #tpu.memory_space<vmem>>) attributes {dimension_semantics = [#tpu.dimension_semantics<parallel>], iteration_bounds = array<i64: 2>, scalar_prefetch = 0 : i64, scratch_operands = 1 : i64, tpu.core_type = #tpu.core_type<tc>, window_params = [{transform_indices = @transform_0, window_bounds = array<i64: 1, 64, 128>}, {pipeline_mode = #tpu.pipeline_mode<synchronous>, transform_indices = @transform_1, window_bounds = array<i64: 1, 1, 128>}, {pipeline_mode = #tpu.pipeline_mode<synchronous>, transform_indices = @transform_2, window_bounds = array<i64: 1, 1, 128>}, {transform_indices = @transform_3, window_bounds = array<i64: 1, 64, 128>}]} {
    %cst = arith.constant 0.000000e+00 : f32
    %0 = vector.broadcast %cst : f32 to vector<1x128xf32>
    %c0 = arith.constant 0 : index
    %c0_0 = arith.constant 0 : index
    %1 = vector.load %arg5[%c0, %c0_0] : memref<1x128xf32, #tpu.memory_space<vmem>>, vector<1x128xf32>
    tpu.vector_store %arg5[%c0, %c0_0], %0 {strides = array<i32>} : memref<1x128xf32, #tpu.memory_space<vmem>>, vector<1x128xf32>,
    %c0_i32 = arith.constant 0 : i32
    %c4_i32 = arith.constant 4 : i32
    %2 = arith.addi %c0_i32, %c4_i32 : i32
    %c1_i32 = arith.constant 1 : i32
    scf.for %arg6 = %c0_i32 to %2 step %c1_i32  : i32 {
      %c16_i32 = arith.constant 16 : i32
      %22 = arith.muli %arg6, %c16_i32 : i32
      %23 = tpu.assume_multiple %22, 16 : i32
      %c0_18 = arith.constant 0 : index
      %24 = arith.index_cast %23 : i32 to index
      %c0_19 = arith.constant 0 : index
      %25 = vector.load %arg1[%c0_18, %24, %c0_19] : memref<1x64x128xf32, #tpu.memory_space<vmem>>, vector<1x16x128xf32>
      %26 = vector.shape_cast %25 : vector<1x16x128xf32> to vector<16x128xf32>
      %c0_20 = arith.constant 0 : index
      %c0_21 = arith.constant 0 : index
      %27 = vector.load %arg5[%c0_20, %c0_21] : memref<1x128xf32, #tpu.memory_space<vmem>>, vector<1x128xf32>
      %28 = arith.mulf %26, %26 : vector<16x128xf32>
      %cst_22 = arith.constant dense<0.000000e+00> : vector<128xf32>
      %29 = vector.multi_reduction <add>, %28, %cst_22 [0] : vector<16x128xf32> to vector<128xf32>
      %30 = vector.shape_cast %29 : vector<128xf32> to vector<1x128xf32>
      %31 = arith.addf %27, %30 : vector<1x128xf32>
      %c0_23 = arith.constant 0 : index
      %c0_24 = arith.constant 0 : index
      %32 = vector.load %arg5[%c0_23, %c0_24] : memref<1x128xf32, #tpu.memory_space<vmem>>, vector<1x128xf32>
      tpu.vector_store %arg5[%c0_23, %c0_24], %31 {strides = array<i32>} : memref<1x128xf32, #tpu.memory_space<vmem>>, vector<1x128xf32>,
    }
    %c4_i32_1 = arith.constant 4 : i32
    %c0_2 = arith.constant 0 : index
    %c0_3 = arith.constant 0 : index
    %3 = vector.load %arg5[%c0_2, %c0_3] : memref<1x128xf32, #tpu.memory_space<vmem>>, vector<1x128xf32>
    %4 = math.sqrt %3 : vector<1x128xf32>
    %cst_4 = arith.constant dense<0.000000e+00> : vector<1xf32>
    %5 = vector.multi_reduction <add>, %4, %cst_4 [1] : vector<1x128xf32> to vector<1xf32>
    %6 = vector.shape_cast %5 : vector<1xf32> to vector<1x1xf32>
    %cst_5 = arith.constant 1.280000e+02 : f32
    %7 = vector.broadcast %cst_5 : f32 to vector<1x1xf32>
    %8 = arith.divf %6, %7 : vector<1x1xf32>
    %cst_6 = arith.constant 9.99999997E-7 : f32
    %9 = vector.broadcast %cst_6 : f32 to vector<1x1xf32>
    %10 = arith.addf %8, %9 : vector<1x1xf32>
    %11 = tpu.reciprocal %10 : vector<1x1xf32> -> vector<1x1xf32>
    %12 = vector.broadcast %11 : vector<1x1xf32> to vector<1x128xf32>
    %13 = arith.mulf %4, %12 : vector<1x128xf32>
    %c0_7 = arith.constant 0 : index
    %c0_8 = arith.constant 0 : index
    %c0_9 = arith.constant 0 : index
    %14 = vector.load %arg2[%c0_7, %c0_8, %c0_9] : memref<1x1x128xf32, #tpu.memory_space<vmem>>, vector<1x1x128xf32>
    %15 = vector.shape_cast %14 : vector<1x1x128xf32> to vector<1x128xf32>
    %16 = arith.mulf %15, %13 : vector<1x128xf32>
    %cst_10 = arith.constant 1.000000e+00 : f32
    %17 = vector.broadcast %cst_10 : f32 to vector<1x128xf32>
    %18 = arith.addf %16, %17 : vector<1x128xf32>
    %c0_11 = arith.constant 0 : index
    %c0_12 = arith.constant 0 : index
    %c0_13 = arith.constant 0 : index
    %19 = vector.load %arg3[%c0_11, %c0_12, %c0_13] : memref<1x1x128xf32, #tpu.memory_space<vmem>>, vector<1x1x128xf32>
    %20 = vector.shape_cast %19 : vector<1x1x128xf32> to vector<1x128xf32>
    %c0_i32_14 = arith.constant 0 : i32
    %c4_i32_15 = arith.constant 4 : i32
    %21 = arith.addi %c0_i32_14, %c4_i32_15 : i32
    %c1_i32_16 = arith.constant 1 : i32
    scf.for %arg6 = %c0_i32_14 to %21 step %c1_i32_16  : i32 {
      %c16_i32 = arith.constant 16 : i32
      %22 = arith.muli %arg6, %c16_i32 : i32
      %23 = tpu.assume_multiple %22, 16 : i32
      %c0_18 = arith.constant 0 : index
      %24 = arith.index_cast %23 : i32 to index
      %c0_19 = arith.constant 0 : index
      %25 = vector.load %arg1[%c0_18, %24, %c0_19] : memref<1x64x128xf32, #tpu.memory_space<vmem>>, vector<1x16x128xf32>
      %26 = vector.shape_cast %25 : vector<1x16x128xf32> to vector<16x128xf32>
      %27 = vector.broadcast %18 : vector<1x128xf32> to vector<16x128xf32>
      %28 = arith.mulf %26, %27 : vector<16x128xf32>
      %29 = vector.broadcast %20 : vector<1x128xf32> to vector<16x128xf32>
      %30 = arith.addf %28, %29 : vector<16x128xf32>
      %c0_20 = arith.constant 0 : index
      %31 = arith.index_cast %23 : i32 to index
      %c0_21 = arith.constant 0 : index
      %32 = vector.load %arg4[%c0_20, %31, %c0_21] : memref<1x64x128xf32, #tpu.memory_space<vmem>>, vector<1x16x128xf32>
      %33 = vector.shape_cast %32 : vector<1x16x128xf32> to vector<16x128xf32>
      %34 = vector.shape_cast %30 : vector<16x128xf32> to vector<1x16x128xf32>
      tpu.vector_store %arg4[%c0_20, %31, %c0_21], %34 {strides = array<i32>} : memref<1x64x128xf32, #tpu.memory_space<vmem>>, vector<1x16x128xf32>,
    }
    %c4_i32_17 = arith.constant 4 : i32
    return
  }
  func.func @transform_0(%arg0: i32) -> (i32, i32, i32) {
    %c0_i32 = arith.constant 0 : i32
    %c0_i32_0 = arith.constant 0 : i32
    %c0_i32_1 = arith.constant 0 : i32
    return %arg0, %c0_i32, %c0_i32_0 : i32, i32, i32
  }
  func.func @transform_1(%arg0: i32) -> (i32, i32, i32) {
    %c0_i32 = arith.constant 0 : i32
    %c0_i32_0 = arith.constant 0 : i32
    %c0_i32_1 = arith.constant 0 : i32
    %c0_i32_2 = arith.constant 0 : i32
    return %c0_i32, %c0_i32_0, %c0_i32_1 : i32, i32, i32
  }
  func.func @transform_2(%arg0: i32) -> (i32, i32, i32) {
    %c0_i32 = arith.constant 0 : i32
    %c0_i32_0 = arith.constant 0 : i32
    %c0_i32_1 = arith.constant 0 : i32
    %c0_i32_2 = arith.constant 0 : i32
    return %c0_i32, %c0_i32_0, %c0_i32_1 : i32, i32, i32
  }
  func.func @transform_3(%arg0: i32) -> (i32, i32, i32) {
    %c0_i32 = arith.constant 0 : i32
    %c0_i32_0 = arith.constant 0 : i32
    %c0_i32_1 = arith.constant 0 : i32
    return %arg0, %c0_i32, %c0_i32_0 : i32, i32, i32
  }
}

</mosaic_0001>

<bundles_post_ra>
// kernel: tpu_custom_call.1
= control target key start
LH: loop header
LB: loop body
LE: loop exit
PB: predicated region body
PF: predicated region fallthrough
CT: control target
= control target key end

     0   :  { %8 = vsyncpa [#allocation4], 0  ;;  %s772_s0 = inlined_call_operand.hbm [shape: f32[2,64,128], index: 0, kind: input, shape index: {}]   ;;  %s773_s1 = inlined_call_operand.vmem [shape: f32[1,1,128], index: 1, kind: input, shape index: {}]   ;;  %s774_s2 = inlined_call_operand.vmem [shape: f32[1,1,128], index: 2, kind: input, shape index: {}]   ;;  %s775_s3 = inlined_call_operand.hbm [shape: f32[2,64,128], index: 3, kind: output, shape index: {}]  }
   0x1   :  { %10 = vsyncpa [#allocation4 + $0x1], 0 }
   0x2   :  { %11 = vsyncpa [#allocation5], 0 }
   0x3   :  { %13 = vsyncpa [#allocation5 + $0x1], 0  ;;  %s596_s12 = smov 0   ;;  %s598_s13 = smov 0  }
   0x4   :  { %s600_s14 = smov 0   ;;  %s602_s15 = smov 0  }
   0x5 LB: > { %s617_s16 = sadd.s32 4294967295, %s559_s15   ;;  %s365_s17 = sadd.s32 4294967294, %s559_s15   ;;  %s559_s15 = sphi %s602_s15, %s788_s15   ;;  %s555_s14 = sphi %s600_s14, %s787_s14   ;;  %s551_s13 = sphi %s598_s13, %s786_s13   ;;  %s547_s12 = sphi %s596_s12, %s785_s12  }
   0x6   : > { %s621_s18 = sadd.s32 1, %s559_s15   ;;  %s26_s19 = sadd.s32 1, %s555_s14 }
   0x7   : > { %s23_s20 = ssub.s32 %s559_s15, %s621_s18  ;;  %p33_p0 = scmp.ne.s32.totalorder %s555_s14, %s551_s13 }
   0x8   : > { %p24_p1 = scmp.eq.s32.totalorder %s23_s20, 0  ;;  %p34_p2 = scmp.eq.s32.totalorder %s559_s15, 0 }
   0x9   : > { %p39_p3 = scmp.ne.s32.totalorder %s551_s13, %s547_s12  ;;  %p40_p4 = scmp.eq.s32.totalorder %s617_s16, 0 }
   0xa   : > { %s633_s21 = scalar_select %p24_p1, %s555_s14, %s26_s19  }
   0xb   : > { %p635_p5 = por %p34_p2, %p33_p0  ;;  %p639_p6 = por %p40_p4, %p39_p3 }
   0xc   : > { %p105_p7 = scmp.eq.s32.totalorder %s617_s16, 1  ;;  %p111_p8 = scmp.eq.s32.totalorder %s365_s17, 1 }
   0xd   : > { %p396_p10 = scmp.lt.s32.totalorder %s559_s15, 2  ;;  %s137_s26 = sand.u32 1, %s555_s14  }
   0xe   : > { %p646_p11 = por %p105_p7, %p33_p0  ;;  %p650_p12 = por %p111_p8, %p39_p3 }
   0xf   : > { %s382_s27 = sshll.u32 %s559_s15, 10  ;;  %s368_s28 = sshll.u32 %s137_s26, 6 }
  0x10   : > { %s779_s24 = scalar_select %p646_p11, 1, 0 }
  0x11   : > { %s780_s25 = scalar_select %p650_p12, 1, 0 }
  0x12   : > { %s659_s4 = scalar_lea.hbm %s772_s0, %s382_s27  ;;  %s141_s5 = scalar_lea.vmem [#allocation3], %s368_s28 }
  0x13   : > { %s148_s6 = sshll.u32 %s141_s5, 4  ;;  %p663_p13 = pnand %p396_p10, %p635_p5  ;;  %s667_s6 = int_to_ptr.vmem [resolvable:$true] %s148_s6 }
  0x14   : > { %s669_s8 = scalar_lea.sflag [#allocation4], %s137_s26  ;;  %s455_s9 = scalar_lea.hbm %s659_s4, 1024 }
  0x15   : > { %p456_p0 = scmp.ne.s32.totalorder %s659_s4, %s455_s9  ;;  %p457_p1 = pneg %p663_p13 }
  0x16   : > { %s460_s17 = scalar_lea.hbm %s772_s0, 2048  ;;  %p461_p4 = scmp.lt.u32.totalorder %s659_s4, %s772_s0 }
  0x17   : > { %p458_p2 = pnand %p457_p1, %p456_p0  ;;  %p462_p5 = scmp.lt.u32.totalorder %s460_s17, %s455_s9 }
  0x18   : > { %p464_p8 = scmp.lt.u32.totalorder %s455_s9, %s659_s4 }
  0x19   : > { %p459_p3 = pneg %p458_p2  ;;  %p463_p7 = por %p462_p5, %p461_p4 }
  0x1b   : > { %p465_p10 = por %p464_p8, %p463_p7 }
  0x1d   : > { %p466_p9 = pnand %p465_p10, %p459_p3 }
  0x1f   : > { %469 = shalt.err (!%p466_p9)
}
  0x20   : > { %s470_s22 = scalar_lea.vmem %s667_s6, 1024  ;;  %s569_s26 = smov [#allocation3]  }
  0x21   : > { %p471_p0 = scmp.ne.s32.totalorder %s667_s6, %s470_s22  ;;  %s475_s27 = sshll.u32 %s569_s26, 4  ;;  %s476_s27 = int_to_ptr.vmem [resolvable:$false] %s475_s27 }
  0x22   : > { %s477_s28 = scalar_lea.vmem %s476_s27, 2048  ;;  %p478_p11 = scmp.lt.s32.totalorder %s667_s6, %s476_s27 }
  0x23   : > { %p473_p2 = pnand %p471_p0, %p457_p1  ;;  %p479_p4 = scmp.lt.s32.totalorder %s477_s28, %s470_s22 }
  0x25   : > { %p474_p12 = pneg %p473_p2  ;;  %p480_p5 = por %p479_p4, %p478_p11 }
  0x27   : > { %p481_p7 = pnand %p480_p5, %p474_p12 }
  0x29   : > { %484 = shalt.err (!%p481_p7)
}
  0x2a   : > { %s570_s29 = smov 128   ;;  %s571_s30 = smov 8  }
  0x2b   : > { %391 = dma.hbm_to_vmem [thread:$0]  (!%p663_p13), %s659_s4, 1024, %s667_s6, %s669_s8, %s570_s29, %s570_s29, %s571_s30  }
  0x2c   : > { %p371_p9 = scmp.ge.s32.totalorder %s559_s15, 1  ;;  %p156_p1 = scmp.lt.s32.totalorder %s559_s15, 3 }
  0x2e   : > { %p157_p3 = pnand %p371_p9, %p156_p1 }
  0x2f   : > { %s700_s5 = sand.u32 (!%p157_p3), 1, %s551_s13  }
  0x30   : > { %160 = sbr.rel (%p157_p3) target bundleno = 295 (0x127), region = 32  ;;  %s372_s9 = sshll.u32 (!%p157_p3), %s700_s5, 6 }
  0x31   : > { %s163_s10 = scalar_lea.sflag (!%p157_p3), [#allocation4], %s700_s5  ;;  %s704_s11 = scalar_lea.vmem (!%p157_p3), [#allocation3], %s372_s9 }
  0x37   : > { %538 = dma.done.wait (%p639_p6), %s163_s10, 1024  }
  0x38   : > { %540 = vsyncadd (%p639_p6), %s163_s10, 4294966272  ;;  %v572_v0 = vmov 0.0   ;;  %s710_s4 = scalar_lea.vmem [#allocation6], %s372_s9  ;;  %s561_s6 = smov 0  }
  0x39   : > { %189 = vst [vmem:[#allocation2] sm:$0x1] %v572_v0 }
  0x3a LB: >> { %s374_s7 = sshll.u32 %s563_s6, 4  ;;  %s195_s6 = sadd.s32 1, %s563_s6   ;;  %s563_s6 = sphi %s561_s6, %s195_s6  }
  0x3b   : >> { %s197_s8 = scalar_lea.vmem %s704_s11, %s374_s7 [#allocation3]  ;;  %p192_p6 = scmp.ge.s32.totalorder %s195_s6, 4  }
  0x3c   : >> { %v198_v1 = vld [vmem:[%s197_s8] sm:$0xff]  ;;  %v199_v2 = vld [vmem:[%s197_s8 + $0x8] sm:$0xff]  ;;  %vm220_vm2 = vcmask (%p192_p6), 1040384   ;;  %s565_s22 = smov (%p192_p6), 0  }
  0x3d   : >> { %v201_v3 = vmul.f32 %v198_v1, %v198_v1  ;;  %v202_v4 = vmul.f32 %v199_v2, %v199_v2  ;;  %v376_v21 = vld [vmem:[%s774_s2] ss:$0 sm:$0xff] (%p192_p6) }
  0x3e   : > { %v229_v26 = vld [vmem:[%s773_s1] sm:$0x1] (%p192_p6) }
  0x3f   : >> { %v203_v5 = vadd.f32 %v202_v4, %v201_v3 }
  0x40   : >> { %v200_v11 = vld [vmem:[#allocation2] sm:$0x1] }
  0x41   : >> { %v204_v6 = vrot.slane %v203_v5, 4 }
  0x43   : >> { %v205_v7 = vadd.f32 %v204_v6, %v203_v5 }
  0x45   : >> { %v206_v8 = vrot.slane %v205_v7, 2 }
  0x47   : >> { %v207_v9 = vadd.f32 %v206_v8, %v205_v7 }
  0x49   : >> { %v208_v10 = vrot.slane %v207_v9, 1  ;;  %194 = sbr.rel (!%p192_p6) target bundleno = 58 (0x3a), region = 94 }
  0x4b   : >> { %v209_v12 = vadd.f32 %v208_v10, %v207_v9 }
  0x4d   : >> { %v210_v13 = vadd.f32 %v209_v12, %v200_v11 }
  0x4f   : >> { %211 = vst [vmem:[#allocation2] sm:$0x1] %v210_v13 }
  0x56   : > { %v212_v14 = vld [vmem:[#allocation2] sm:$0x1] }
  0x57   : > { %451 = vrsqrt.f32 %v212_v14  ;;  %vm215_vm0 = vcmp.eq.f32.partialorder %v212_v14, inf  ;;  %v218_v16 = vand.u32 2147483648, %v212_v14  ;;  %vm217_vm1 = vcmp.eq.f32.partialorder %v212_v14, 0.0 }
  0x61   : > { %v452_v15 = vpop.eup %451 }
  0x62   : > { %v214_v17 = vmul.f32 %v452_v15, %v212_v14 }
  0x64   : > { %v216_v18 = vsel %vm215_vm0, %v212_v14, %v214_v17 }
  0x65   : > { %v219_v19 = vsel %vm217_vm1, %v218_v16, %v216_v18 }
  0x66   : > { %v221_v20 = vsel %vm220_vm2, %v219_v19, 0.0 }
  0x67   : > { %222 = vadd.xlane.f32.xlu0 %v221_v20 }
  0xf4   : > { %v223_v22 = vpop.xlane.xlu0 %222 }
  0xf5   : > { %v225_v23 = vmul.f32 0.0078125, %v223_v22 }
  0xf7   : > { %v226_v24 = vadd.f32 1e-06, %v225_v23 }
  0xf9   : > { %453 = vrcp.f32 %v226_v24 }
 0x103   : > { %v454_v25 = vpop.eup %453 }
 0x104   : > { %v228_v27 = vmul.f32 %v454_v25, %v219_v19 }
 0x106   : > { %v230_v28 = vmul.f32 %v229_v26, %v228_v27 }
 0x108   : > { %v231_v29 = vadd.f32 1.0, %v230_v28 }
 0x109 LB: >> { %v244_v30 = vlaneseq  ;;  %s375_s26 = sshll.u32 %s567_s22, 4  ;;  %s238_s22 = sadd.s32 1, %s567_s22   ;;  %s567_s22 = sphi %s565_s22, %s238_s22  }
 0x10a   : >> { %s240_s27 = scalar_lea.vmem %s704_s11, %s375_s26 [#allocation3]  ;;  %s259_s28 = scalar_lea.vmem %s710_s4, %s375_s26 [#allocation6] }
 0x10b   : >> { %v245_v31 = vshrl.u32 %v244_v30, 7  ;;  %v241_v33 = vld [vmem:[%s240_s27] sm:$0xff]  ;;  %v242_v34 = vld [vmem:[%s240_s27 + $0x8] sm:$0xff]  ;;  %p235_p11 = scmp.ge.s32.totalorder %s238_s22, 4  }
 0x10c   : > { %s383_s29 = sshll.u32 (%p235_p11), %s617_s16, 10  ;;  %s276_s6 = sshll.u32 (%p235_p11), %s710_s4, 4  ;;  %s728_s6 = int_to_ptr.vmem [resolvable:$true] %s276_s6 }
 0x10d   : >> { %v246_v32 = vsub.s32 0, %v245_v31  ;;  %s725_s10 = scalar_lea.hbm (%p235_p11), %s775_s3, %s383_s29  ;;  %s263_s7 = scalar_lea.sflag (%p235_p11), [#allocation5], %s700_s5 }
 0x10e   : > { %s485_s8 = scalar_lea.vmem (%p235_p11), %s728_s6, 1024  ;;  %p782_p13 = scmp.ne.s32.totalorder (%p235_p11), %s779_s24, 0 }
 0x10f   : >> { %v247_v35 = vrot.slane %v231_v29, %v246_v32  ;;  %237 = sbr.rel (!%p235_p11) target bundleno = 265 (0x109), region = 105  ;;  %p486_p12 = scmp.ne.s32.totalorder (%p235_p11), %s728_s6, %s485_s8 }
 0x110   : > { %s573_s11 = smov (%p235_p11), [#allocation6]  }
 0x111   : >> { %v249_v36 = vmul.f32 %v247_v35, %v241_v33  ;;  %v250_v37 = vmul.f32 %v247_v35, %v242_v34  ;;  %p487_p8 = pnand (%p235_p11), %p486_p12, %p782_p13  ;;  %s489_s23 = sshll.u32 (%p235_p11), %s573_s11, 4  ;;  %s490_s23 = int_to_ptr.vmem [resolvable:$false] %s489_s23 }
 0x112   : > { %s491_s16 = scalar_lea.vmem (%p235_p11), %s490_s23, 2048  ;;  %p492_p0 = scmp.lt.s32.totalorder (%p235_p11), %s728_s6, %s490_s23 }
 0x113   : >> { %v257_v38 = vadd.f32 %v376_v21, %v249_v36  ;;  %v258_v39 = vadd.f32 %v376_v21, %v250_v37  ;;  %p488_p10 = pneg (%p235_p11), %p487_p8  ;;  %p493_p2 = scmp.lt.s32.totalorder (%p235_p11), %s491_s16, %s485_s8 }
 0x115   : >> { %260 = vst [vmem:[%s259_s28] sm:$0xff] %v257_v38  ;;  %261 = vst [vmem:[%s259_s28 + $0x8] sm:$0xff] %v258_v39  ;;  %p494_p4 = por (%p235_p11), %p493_p2, %p492_p0 }
 0x117   : > { %p495_p5 = pnand %p494_p4, %p488_p10 }
 0x119   : > { %498 = shalt.err (!%p495_p5)
}
 0x11a   : > { %s499_s4 = scalar_lea.hbm %s725_s10, 1024  ;;  %s503_s20 = scalar_lea.hbm %s775_s3, 2048 }
 0x11b   : > { %p500_p7 = scmp.ne.s32.totalorder %s725_s10, %s499_s4  ;;  %p504_p3 = scmp.lt.u32.totalorder %s725_s10, %s775_s3 }
 0x11c   : > { %p505_p6 = scmp.lt.u32.totalorder %s503_s20, %s499_s4  ;;  %p507_p12 = scmp.lt.u32.totalorder %s499_s4, %s725_s10 }
 0x11d   : > { %p501_p9 = pnand %p500_p7, %p782_p13 }
 0x11e   : > { %p506_p11 = por %p505_p6, %p504_p3 }
 0x11f   : > { %p502_p1 = pneg %p501_p9 }
 0x120   : > { %p508_p8 = por %p507_p12, %p506_p11 }
 0x122   : > { %p509_p10 = pnand %p508_p8, %p502_p1 }
 0x124   : > { %512 = shalt.err (!%p509_p10)
}
 0x125   : > { %s574_s27 = smov 128   ;;  %s575_s28 = smov 8  }
 0x126   : > { %386 = dma.vmem_to_hbm [thread:$0]  (%p782_p13), %s728_s6, 1024, %s725_s10, %s263_s7, %s574_s27, %s574_s27, %s575_s28  }
 0x127 PF: > { %s291_s29 = sand.u32 1, %s547_s12   ;;  %p783_p0 = scmp.ne.s32.totalorder %s780_s25, 0 }
 0x128   : > { %p784_p2 = scmp.ge.s32.totalorder %s559_s15, 2  ;;  %s292_s30 = scalar_lea.sflag [#allocation5], %s291_s29 }
 0x12a   : > { %p393_p4 = pnand %p784_p2, %p783_p0 }
 0x12c   : > { %542 = dma.done.wait (!%p393_p4), %s292_s30, 1024  }
 0x12d   : > { %544 = vsyncadd (!%p393_p4), %s292_s30, 4294966272  ;;  %p16_p5 = scmp.ge.s32.totalorder %s621_s18, 4   ;;  %s785_s12 = smov %s551_s13 }
 0x12e   : > { %s786_s13 = smov %s555_s14  ;;  %s787_s14 = smov %s633_s21 }
 0x12f   : > { %s788_s15 = smov %s621_s18  ;;  %18 = sbr.rel (!%p16_p5) target bundleno = 5 (0x5), region = 116 }
 0x136   :  { %297 = vsyncpa [#allocation4], 1 }
 0x137   :  { %299 = vsyncpa [#allocation4 + $0x1], 1 }
 0x138   :  { %300 = vsyncpa [#allocation5], 1 }
 0x139   :  { %302 = vsyncpa [#allocation5 + $0x1], 1 }

</bundles_post_ra>
